<compile_context>
chip_gen: v6e
topology: v6e:2x2x1
jax: 0.10.0
libtpu: 0.0.40
codegen_flags: <defaults>
</compile_context>

<pallas_src>
import numpy as np
import jax
import jax.numpy as jnp
from jax.experimental import pallas as pl
from jax.experimental.pallas import tpu as pltpu


# ------------------------------- the kernel --------------------------------

def _chan_attn_kernel(x_ref, w1_ref, b1_ref, w2_ref, b2_ref, o_ref):
    # x_ref : (Bt, C, H*W)   activations (one batch block)
    # w1_ref: (C, Cm)        conv1 weight^T with BN1 scale folded in
    # b1_ref: (1, Cm)        BN1 shift
    # w2_ref: (Cm, C)        conv2 weight^T with BN2 scale folded in
    # b2_ref: (1, C)         BN2 shift
    # o_ref : (Bt, C)
    inv_hw = jnp.float32(1.0 / x_ref.shape[-1])

    # adaptive_avg_pool2d(x, (1,1)) -> global mean over H*W (lane reduce).
    pooled = jnp.sum(x_ref[...], axis=-1) * inv_hw                         # (Bt, C)

    # conv1 (1x1, C -> Cm) with BN1 scale folded into the weight, + shift + ReLU.
    y1 = jnp.dot(pooled, w1_ref[...], preferred_element_type=jnp.float32)  # (Bt, Cm)
    y1 = jnp.maximum(y1 + b1_ref[...], 0.0)

    # conv2 (1x1, Cm -> C) with BN2 scale folded into the weight, + shift + ReLU.
    y2 = jnp.dot(y1, w2_ref[...], preferred_element_type=jnp.float32)      # (Bt, C)
    o_ref[...] = jnp.maximum(y2 + b2_ref[...], 0.0)


# ------------------------------ the wrapper --------------------------------

def chan_attn_forward(x, w1, w2, bn1, bn2, eps=1e-5, batch_block=None):
    """ChanAttn forward.

    x  : (B, C, H, W) f32.
    w1 : (Cm, C, 1, 1) weight of the first 1x1 conv (C -> Cm = C // 16), no bias.
    w2 : (C, Cm, 1, 1) weight of the second 1x1 conv (Cm -> C), no bias.
    bn1/bn2: tuples (gamma, beta, running_mean, running_var) of width Cm / C.
    Returns (B, C, 1, 1) f32.
    """
    B, C, H, W = x.shape
    Cm = int(np.asarray(w1).shape[0])
    HW = H * W

    def fold(bn):
        g, b, m, v = (np.asarray(t, np.float32) for t in bn)
        s = g / np.sqrt(v + eps)
        return s, b - m * s

    s1, t1 = fold(bn1)
    s2, t2 = fold(bn2)

    # Fold BN scales into the bias-free 1x1 conv weights host-side.
    w1n = np.asarray(w1, np.float32).reshape(Cm, C)          # (out=Cm, in=C)
    w2n = np.asarray(w2, np.float32).reshape(C, Cm)          # (out=C,  in=Cm)
    w1f = (w1n * s1[:, None]).T                              # (C, Cm):  pooled @ w1f
    w2f = (w2n * s2[:, None]).T                              # (Cm, C):  y1 @ w2f
    b1 = t1.reshape(1, Cm)
    b2 = t2.reshape(1, C)

    # Lane-dense input layout: spatial dims collapsed onto the lane axis.
    x3 = x.reshape(B, C, HW)

    # Whole batch per grid step by default (per-step overhead dominates at these
    # sizes); batch_block is only for very large B.
    Bt = B if batch_block is None else max(1, min(int(batch_block), B))
    while B % Bt:            # keep blocks exact multiples of the array
        Bt -= 1
    grid = (B // Bt,)

    out2 = pl.pallas_call(
        _chan_attn_kernel,
        out_shape=jax.ShapeDtypeStruct((B, C), jnp.float32),
        grid=grid,
        in_specs=[
            pl.BlockSpec((Bt, C, HW), lambda b: (b, 0, 0)),   # x
            pl.BlockSpec((C, Cm), lambda b: (0, 0)),          # w1 (scale-folded, T)
            pl.BlockSpec((1, Cm), lambda b: (0, 0)),          # bn1 shift
            pl.BlockSpec((Cm, C), lambda b: (0, 0)),          # w2 (scale-folded, T)
            pl.BlockSpec((1, C), lambda b: (0, 0)),           # bn2 shift
        ],
        out_specs=pl.BlockSpec((Bt, C), lambda b: (b, 0)),
        compiler_params=pltpu.CompilerParams(dimension_semantics=("parallel",)),
    )(x3, jnp.asarray(w1f), jnp.asarray(b1), jnp.asarray(w2f), jnp.asarray(b2))

    return out2.reshape(B, C, 1, 1)


# ----------------------- pure-JAX reference (check) ------------------------

def chan_attn_reference(x, w1, w2, bn1, bn2, eps=1e-5):
    B, C, H, W = x.shape
    Cm = int(np.asarray(w1).shape[0])

    def fold(bn):
        g, b, m, v = (jnp.asarray(t, jnp.float32) for t in bn)
        s = g / jnp.sqrt(v + eps)
        return s, b - m * s

    s1, t1 = fold(bn1)
    s2, t2 = fold(bn2)

    pooled = jnp.mean(x, axis=(2, 3))                                # (B, C)
    w1n = jnp.asarray(w1, jnp.float32).reshape(Cm, C)
    w2n = jnp.asarray(w2, jnp.float32).reshape(C, Cm)
    y1 = jnp.maximum(pooled @ w1n.T * s1 + t1, 0.0)                  # (B, Cm)
    y2 = jnp.maximum(y1 @ w2n.T * s2 + t2, 0.0)                      # (B, C)
    return y2.reshape(B, C, 1, 1)


# ---------------------------------- main ------------------------------------

if __name__ == "__main__":
    # in_chan must be >= 16 so that in_chan // 16 >= 1.
    B, C, H, W = 2, 64, 16, 16
    Cm = C // 16

    key = jax.random.PRNGKey(0)
    kx, k1, k2 = jax.random.split(key, 3)

    x = jax.random.normal(kx, (B, C, H, W), jnp.float32)
    # Kaiming-normal-style init for the bias-free 1x1 convs.
    w1 = jax.random.normal(k1, (Cm, C, 1, 1), jnp.float32) * np.sqrt(2.0 / C)
    w2 = jax.random.normal(k2, (C, Cm, 1, 1), jnp.float32) * np.sqrt(2.0 / Cm)

    # BatchNorm params (gamma, beta, running_mean, running_var) — made nontrivial
    # to exercise the host-side scale/shift fold.
    bn1 = (1.0 + 0.05 * np.arange(Cm, dtype=np.float32),
           0.01 * np.arange(Cm, dtype=np.float32),
           0.02 * np.arange(Cm, dtype=np.float32) - 0.03,
           1.0 + 0.04 * np.arange(Cm, dtype=np.float32))
    bn2 = (1.0 + 0.02 * np.arange(C, dtype=np.float32),
           0.005 * np.arange(C, dtype=np.float32),
           0.01 * np.arange(C, dtype=np.float32) - 0.2,
           1.0 + 0.01 * np.arange(C, dtype=np.float32))

    out = chan_attn_forward(x, w1, w2, bn1, bn2)
    out = jax.block_until_ready(out)

    ref = chan_attn_reference(x, w1, w2, bn1, bn2)
    np.testing.assert_allclose(np.asarray(out), np.asarray(ref), rtol=1e-4, atol=1e-5)
    print("KERNEL_OK")
</pallas_src>

<mosaic_0001>
module attributes {stable_mosaic.version = 11 : i64} {
  func.func @_chan_attn_kernel(%arg0: i32, %arg1: memref<2x64x256xf32, #tpu.memory_space<vmem>>, %arg2: memref<64x4xf32, #tpu.memory_space<vmem>>, %arg3: memref<1x4xf32, #tpu.memory_space<vmem>>, %arg4: memref<4x64xf32, #tpu.memory_space<vmem>>, %arg5: memref<1x64xf32, #tpu.memory_space<vmem>>, %arg6: memref<2x64xf32, #tpu.memory_space<vmem>>) attributes {dimension_semantics = [#tpu.dimension_semantics<parallel>], iteration_bounds = array<i64: 1>, scalar_prefetch = 0 : i64, scratch_operands = 0 : i64, tpu.core_type = #tpu.core_type<tc>, window_params = [{transform_indices = @transform_0, window_bounds = array<i64: 2, 64, 256>}, {pipeline_mode = #tpu.pipeline_mode<synchronous>, transform_indices = @transform_1, window_bounds = array<i64: 64, 4>}, {pipeline_mode = #tpu.pipeline_mode<synchronous>, transform_indices = @transform_2, window_bounds = array<i64: 1, 4>}, {pipeline_mode = #tpu.pipeline_mode<synchronous>, transform_indices = @transform_3, window_bounds = array<i64: 4, 64>}, {pipeline_mode = #tpu.pipeline_mode<synchronous>, transform_indices = @transform_4, window_bounds = array<i64: 1, 64>}, {transform_indices = @transform_5, window_bounds = array<i64: 2, 64>}]} {
    %c0 = arith.constant 0 : index
    %c0_0 = arith.constant 0 : index
    %c0_1 = arith.constant 0 : index
    %0 = vector.load %arg1[%c0, %c0_0, %c0_1] : memref<2x64x256xf32, #tpu.memory_space<vmem>>, vector<2x64x256xf32>
    %cst = arith.constant dense<0.000000e+00> : vector<2x64xf32>
    %1 = vector.multi_reduction <add>, %0, %cst [2] : vector<2x64x256xf32> to vector<2x64xf32>
    %cst_2 = arith.constant 3.906250e-03 : f32
    %2 = vector.broadcast %cst_2 : f32 to vector<2x64xf32>
    %3 = arith.mulf %1, %2 : vector<2x64xf32>
    %c0_3 = arith.constant 0 : index
    %c0_4 = arith.constant 0 : index
    %4 = vector.load %arg2[%c0_3, %c0_4] : memref<64x4xf32, #tpu.memory_space<vmem>>, vector<64x4xf32>
    %cst_5 = arith.constant dense<0.000000e+00> : vector<2x4xf32>
    %5 = tpu.matmul %3, %4, %cst_5 {dimension_numbers = #tpu.dot_dimension_numbers<[1], [0], [0], [1], [0, 0, 1, 1], [], []>} : vector<2x64xf32>, vector<64x4xf32>, vector<2x4xf32> -> vector<2x4xf32>
    %c0_6 = arith.constant 0 : index
    %c0_7 = arith.constant 0 : index
    %6 = vector.load %arg3[%c0_6, %c0_7] : memref<1x4xf32, #tpu.memory_space<vmem>>, vector<1x4xf32>
    %7 = vector.broadcast %6 : vector<1x4xf32> to vector<2x4xf32>
    %8 = arith.addf %5, %7 : vector<2x4xf32>
    %cst_8 = arith.constant 0.000000e+00 : f32
    %9 = vector.broadcast %cst_8 : f32 to vector<2x4xf32>
    %10 = arith.maximumf %8, %9 : vector<2x4xf32>
    %c0_9 = arith.constant 0 : index
    %c0_10 = arith.constant 0 : index
    %11 = vector.load %arg4[%c0_9, %c0_10] : memref<4x64xf32, #tpu.memory_space<vmem>>, vector<4x64xf32>
    %cst_11 = arith.constant dense<0.000000e+00> : vector<2x64xf32>
    %12 = tpu.matmul %10, %11, %cst_11 {dimension_numbers = #tpu.dot_dimension_numbers<[1], [0], [0], [1], [0, 0, 1, 1], [], []>} : vector<2x4xf32>, vector<4x64xf32>, vector<2x64xf32> -> vector<2x64xf32>
    %c0_12 = arith.constant 0 : index
    %c0_13 = arith.constant 0 : index
    %13 = vector.load %arg5[%c0_12, %c0_13] : memref<1x64xf32, #tpu.memory_space<vmem>>, vector<1x64xf32>
    %14 = vector.broadcast %13 : vector<1x64xf32> to vector<2x64xf32>
    %15 = arith.addf %12, %14 : vector<2x64xf32>
    %cst_14 = arith.constant 0.000000e+00 : f32
    %16 = vector.broadcast %cst_14 : f32 to vector<2x64xf32>
    %17 = arith.maximumf %15, %16 : vector<2x64xf32>
    %c0_15 = arith.constant 0 : index
    %c0_16 = arith.constant 0 : index
    %18 = vector.load %arg6[%c0_15, %c0_16] : memref<2x64xf32, #tpu.memory_space<vmem>>, vector<2x64xf32>
    tpu.vector_store %arg6[%c0_15, %c0_16], %17 {strides = array<i32>} : memref<2x64xf32, #tpu.memory_space<vmem>>, vector<2x64xf32>,
    return
  }
  func.func @transform_0(%arg0: i32) -> (i32, i32, i32) {
    %c0_i32 = arith.constant 0 : i32
    %c0_i32_0 = arith.constant 0 : i32
    %c0_i32_1 = arith.constant 0 : i32
    return %arg0, %c0_i32, %c0_i32_0 : i32, i32, i32
  }
  func.func @transform_1(%arg0: i32) -> (i32, i32) {
    %c0_i32 = arith.constant 0 : i32
    %c0_i32_0 = arith.constant 0 : i32
    %c0_i32_1 = arith.constant 0 : i32
    return %c0_i32, %c0_i32_0 : i32, i32
  }
  func.func @transform_2(%arg0: i32) -> (i32, i32) {
    %c0_i32 = arith.constant 0 : i32
    %c0_i32_0 = arith.constant 0 : i32
    %c0_i32_1 = arith.constant 0 : i32
    return %c0_i32, %c0_i32_0 : i32, i32
  }
  func.func @transform_3(%arg0: i32) -> (i32, i32) {
    %c0_i32 = arith.constant 0 : i32
    %c0_i32_0 = arith.constant 0 : i32
    %c0_i32_1 = arith.constant 0 : i32
    return %c0_i32, %c0_i32_0 : i32, i32
  }
  func.func @transform_4(%arg0: i32) -> (i32, i32) {
    %c0_i32 = arith.constant 0 : i32
    %c0_i32_0 = arith.constant 0 : i32
    %c0_i32_1 = arith.constant 0 : i32
    return %c0_i32, %c0_i32_0 : i32, i32
  }
  func.func @transform_5(%arg0: i32) -> (i32, i32) {
    %c0_i32 = arith.constant 0 : i32
    %c0_i32_0 = arith.constant 0 : i32
    return %arg0, %c0_i32 : i32, i32
  }
}

</mosaic_0001>

<bundles_post_ra>
// kernel: tpu_custom_call.1
= control target key start
LH: loop header
LB: loop body
LE: loop exit
PB: predicated region body
PF: predicated region fallthrough
CT: control target
= control target key end

     0   :  { %10 = vsyncpa [#allocation3], 0  ;;  %s613_s0 = inlined_call_operand.hbm [shape: f32[2,64,256], index: 0, kind: input, shape index: {}]   ;;  %s614_s1 = inlined_call_operand.vmem [shape: f32[64,4], index: 1, kind: input, shape index: {}]   ;;  %s615_s2 = inlined_call_operand.vmem [shape: f32[1,4], index: 2, kind: input, shape index: {}]   ;;  %s616_s3 = inlined_call_operand.vmem [shape: f32[4,64], index: 3, kind: input, shape index: {}]   ;;  %s617_s4 = inlined_call_operand.vmem [shape: f32[1,64], index: 4, kind: input, shape index: {}]   ;;  %s618_s5 = inlined_call_operand.hbm [shape: f32[2,64], index: 5, kind: output, shape index: {}]  }
   0x1   :  { %11 = vsyncpa [#allocation4], 0  ;;  %s526_s18 = smov [#allocation2]  }
   0x2   :  { %s17_s19 = sshll.u32 %s526_s18, 4  ;;  %s18_s19 = int_to_ptr.vmem [resolvable:$true] %s17_s19 }
   0x3   :  { %s490_s20 = scalar_lea.vmem %s18_s19, 4096  ;;  %p495_p1 = scmp.lt.s32.totalorder %s18_s19, %s18_s19 }
   0x4   :  { %p491_p0 = scmp.ne.s32.totalorder %s18_s19, %s490_s20  ;;  %p496_p2 = scmp.lt.s32.totalorder %s490_s20, %s490_s20 }
   0x6   :  { %p497_p3 = por %p496_p2, %p495_p1 }
   0x8   :  { %p498_p4 = pnand %p497_p3, %p491_p0 }
   0xa   :  { %501 = shalt.err (!%p498_p4)
}
   0xb   :  { %s527_s21 = smov 256   ;;  %s528_s22 = smov 16  }
   0xc   :  { %23 = dma.hbm_to_vmem [thread:$0]  %s613_s0, 4096, %s18_s19, [#allocation3], %s527_s21, %s527_s21, %s528_s22  }
   0xd   :  { %522 = dma.done.wait [#allocation3], 4096  }
   0xe   :  { %523 = vsyncadd [#allocation3], 4294963200  ;;  %v51_v0 = vld [vmem:[#allocation2 + $0x80] sm:$0xff]  ;;  %v52_v1 = vld [vmem:[#allocation2 + $0x88] sm:$0xff]  ;;  %v529_v48 = vmov 0.0   ;;  %vm530_vm0 = vmmov 0   ;;  %v162_v61 = vlaneseq }
   0xf   :  { %v35_v2 = vld [vmem:[#allocation2] sm:$0xff]  ;;  %v91_v3 = vadd.f32 %v52_v1, %v51_v0  ;;  %v36_v4 = vld [vmem:[#allocation2 + $0x8] sm:$0xff]  ;;  %v53_v5 = vld [vmem:[#allocation2 + $0x90] sm:$0xff]  ;;  %452 = vmatprep.subr.mxu0 %v529_v48  ;;  %471 = vmatprep.subr.mxu1 %v529_v48  ;;  %vm173_vm1 = vcmask 130112   ;;  %vm180_vm2 = vcmask 195712   ;;  %vm187_vm3 = vcmask 261312  }
  0x10   :  { %v54_v6 = vld [vmem:[#allocation2 + $0x98] sm:$0xff]  ;;  %v67_v7 = vadd.f32 %v36_v4, %v35_v2  ;;  %v37_v8 = vld [vmem:[#allocation2 + $0x10] sm:$0xff]  ;;  %v55_v12 = vld [vmem:[#allocation2 + $0xa0] sm:$0xff]  ;;  %468 = vmatprep.mubr.msk.f32.mxu0 %vm530_vm0, %v529_v48  ;;  %473 = vmatprep.mubr.msk.f32.mxu1 %vm530_vm0, %v529_v48  ;;  %v163_v0 = vand.u32 127, %v162_v61  ;;  %v165_v2 = vshrl.u32 %v162_v61, 7  ;;  %vm194_vm4 = vcmask 326912  }
  0x11   :  { %v38_v9 = vld [vmem:[#allocation2 + $0x18] sm:$0xff]  ;;  %92 = vadd.xlane.f32.xlu1 %v91_v3  ;;  %v94_v10 = vadd.f32 %v54_v6, %v53_v5  ;;  %v56_v13 = vld [vmem:[#allocation2 + $0xa8] sm:$0xff]  ;;  %v39_v14 = vld [vmem:[#allocation2 + $0x20] sm:$0xff]  ;;  %vm201_vm5 = vcmask 392512   ;;  %vm208_vm6 = vcmask 458112   ;;  %vm215_vm7 = vcmask 523712  }
  0x12   :  { %68 = vadd.xlane.f32.xlu0 %v67_v7  ;;  %v70_v11 = vadd.f32 %v38_v9, %v37_v8  ;;  %v40_v15 = vld [vmem:[#allocation2 + $0x28] sm:$0xff]  ;;  %v97_v16 = vadd.f32 %v56_v13, %v55_v12  ;;  %v57_v18 = vld [vmem:[#allocation2 + $0xb0] sm:$0xff]  ;;  %v58_v19 = vld [vmem:[#allocation2 + $0xb8] sm:$0xff]  ;;  %v168_v4 = vadd.s32 4294967288, %v163_v0  ;;  %v175_v5 = vadd.s32 4294967280, %v163_v0  ;;  %s531_s20 = smov [#allocation5]  }
  0x13   :  { %v73_v17 = vadd.f32 %v40_v15, %v39_v14  ;;  %v41_v20 = vld [vmem:[#allocation2 + $0x30] sm:$0xff]  ;;  %v42_v21 = vld [vmem:[#allocation2 + $0x38] sm:$0xff]  ;;  %v100_v22 = vadd.f32 %v58_v19, %v57_v18  ;;  %v59_v24 = vld [vmem:[#allocation2 + $0xc0] sm:$0xff]  ;;  %v182_v6 = vadd.s32 4294967272, %v163_v0  ;;  %v189_v7 = vadd.s32 4294967264, %v163_v0  ;;  %s427_s21 = sshll.u32 %s531_s20, 4  ;;  %s428_s21 = int_to_ptr.vmem [resolvable:$true] %s427_s21 }
  0x14   :  { %v76_v23 = vadd.f32 %v42_v21, %v41_v20  ;;  %v60_v25 = vld [vmem:[#allocation2 + $0xc8] sm:$0xff]  ;;  %v43_v26 = vld [vmem:[#allocation2 + $0x40] sm:$0xff]  ;;  %v61_v30 = vld [vmem:[#allocation2 + $0xd0] sm:$0xff]  ;;  %v196_v9 = vadd.s32 4294967256, %v163_v0  ;;  %v171_v12 = vsub.s32 %v168_v4, %v165_v2  ;;  %v178_v13 = vsub.s32 %v175_v5, %v165_v2  ;;  %p507_p6 = scmp.lt.s32.totalorder %s428_s21, %s428_s21 }
  0x15   :  { %95 = vadd.xlane.f32.xlu1 %v94_v10  ;;  %v44_v27 = vld [vmem:[#allocation2 + $0x48] sm:$0xff]  ;;  %v103_v28 = vadd.f32 %v60_v25, %v59_v24  ;;  %v62_v31 = vld [vmem:[#allocation2 + $0xd8] sm:$0xff]  ;;  %v45_v32 = vld [vmem:[#allocation2 + $0x50] sm:$0xff]  ;;  %v166_v10 = vsub.s32 %v163_v0, %v165_v2  ;;  %v203_v14 = vadd.s32 4294967248, %v163_v0  ;;  %vm256_vm8 = vcmask 1041409  }
  0x16   :  { %71 = vadd.xlane.f32.xlu0 %v70_v11  ;;  %v79_v29 = vadd.f32 %v44_v27, %v43_v26  ;;  %v46_v33 = vld [vmem:[#allocation2 + $0x58] sm:$0xff]  ;;  %v106_v34 = vadd.f32 %v62_v31, %v61_v30  ;;  %v63_v36 = vld [vmem:[#allocation2 + $0xe0] sm:$0xff]  ;;  %v64_v37 = vld [vmem:[#allocation2 + $0xe8] sm:$0xff]  ;;  %v199_v20 = vsub.s32 %v196_v9, %v165_v2  ;;  %vm258_vm9 = vcmask 523264  }
  0x17   :  { %v82_v35 = vadd.f32 %v46_v33, %v45_v32  ;;  %v47_v38 = vld [vmem:[#allocation2 + $0x60] sm:$0xff]  ;;  %v48_v39 = vld [vmem:[#allocation2 + $0x68] sm:$0xff]  ;;  %v109_v40 = vadd.f32 %v64_v37, %v63_v36  ;;  %v65_v42 = vld [vmem:[#allocation2 + $0xf0] sm:$0xff]  ;;  %v210_v33 = vadd.s32 4294967240, %v163_v0  ;;  %vm344_vm10 = vcmask 1043456  }
  0x18   :  { %v85_v41 = vadd.f32 %v48_v39, %v47_v38  ;;  %v66_v43 = vld [vmem:[#allocation2 + $0xf8] sm:$0xff]  ;;  %v49_v44 = vld [vmem:[#allocation2 + $0x70] sm:$0xff]  ;;  %v136_v51 = vld [vmem:[%s614_s1 + $0x28] sm:$0xff]  ;;  %vm340_vm11 = vcmask 31744   ;;  %vm419_vm12 = vcmask 517120  }
  0x19   :  { %98 = vadd.xlane.f32.xlu1 %v97_v16  ;;  %v50_v45 = vld [vmem:[#allocation2 + $0x78] sm:$0xff]  ;;  %v112_v46 = vadd.f32 %v66_v43, %v65_v42  ;;  %v137_v50 = vld [vmem:[%s614_s1 + $0x30] sm:$0xff]  ;;  %v135_v52 = vld [vmem:[%s614_s1 + $0x20] sm:$0xff]  ;;  %v185_v16 = vsub.s32 %v182_v6, %v165_v2 }
  0x1a   :  { %74 = vadd.xlane.f32.xlu0 %v73_v17  ;;  %v88_v47 = vadd.f32 %v50_v45, %v49_v44  ;;  %v138_v49 = vld [vmem:[%s614_s1 + $0x38] sm:$0xff]  ;;  %v133_v54 = vld [vmem:[%s614_s1 + $0x10] sm:$0xff]  ;;  %v132_v55 = vld [vmem:[%s614_s1 + $0x8] sm:$0xff]  ;;  %v192_v17 = vsub.s32 %v189_v7, %v165_v2 }
  0x1b   :  { %453 = vmatpush3.msra.mxu0 %v138_v49  ;;  %v134_v53 = vld [vmem:[%s614_s1 + $0x18] sm:$0xff]  ;;  %v131_v56 = vld [vmem:[%s614_s1] sm:$0xff] }
  0x1c   :  { %454 = vmatprep.subr.mxu0 %v529_v48 }
  0x1d   :  { %101 = vadd.xlane.f32.xlu1 %v100_v22  ;;  %455 = vmatpush3.msra.mxu0 %v137_v50  ;;  %v213_v50 = vsub.s32 %v210_v33, %v165_v2 }
  0x1e   :  { %77 = vadd.xlane.f32.xlu0 %v76_v23  ;;  %456 = vmatprep.subr.mxu0 %v529_v48 }
  0x1f   :  { %457 = vmatpush3.msra.mxu0 %v136_v51 }
  0x20   :  { %458 = vmatprep.subr.mxu0 %v529_v48 }
  0x21   :  { %104 = vadd.xlane.f32.xlu1 %v103_v28  ;;  %459 = vmatpush3.msra.mxu0 %v135_v52 }
  0x22   :  { %80 = vadd.xlane.f32.xlu0 %v79_v29  ;;  %460 = vmatprep.subr.mxu0 %v529_v48  ;;  %v206_v29 = vsub.s32 %v203_v14, %v165_v2 }
  0x23   :  { %461 = vmatpush3.msra.mxu0 %v134_v53 }
  0x24   :  { %462 = vmatprep.subr.mxu0 %v529_v48 }
  0x25   :  { %107 = vadd.xlane.f32.xlu1 %v106_v34  ;;  %463 = vmatpush3.msra.mxu0 %v133_v54 }
  0x26   :  { %83 = vadd.xlane.f32.xlu0 %v82_v35  ;;  %464 = vmatprep.subr.mxu0 %v529_v48 }
  0x27   :  { %465 = vmatpush3.msra.mxu0 %v132_v55 }
  0x28   :  { %466 = vmatprep.subr.mxu0 %v529_v48 }
  0x29   :  { %110 = vadd.xlane.f32.xlu1 %v109_v40  ;;  %467 = vmatpush3.msra.mxu0 %v131_v56 }
  0x2a   :  { %86 = vadd.xlane.f32.xlu0 %v85_v41 }
  0x2d   :  { %113 = vadd.xlane.f32.xlu1 %v112_v46 }
  0x2e   :  { %89 = vadd.xlane.f32.xlu0 %v88_v47 }
  0x9a   :  { %v93_v57 = vpop.xlane.xlu1 %92 }
  0x9b   :  { %v69_v58 = vpop.xlane.xlu0 %68  ;;  %v123_v22 = vmul.f32 0.00390625, %v93_v57 }
  0x9c   :  { %v115_v26 = vmul.f32 0.00390625, %v69_v58 }
  0x9d   :  { %v220_v38 = vrot.slane %v123_v22, %v166_v10 }
  0x9e   :  { %v96_v59 = vpop.xlane.xlu1 %95  ;;  %v167_v43 = vrot.slane %v115_v26, %v166_v10  ;;  %v332_v10 = vld [vmem:[%s616_s3] sm:$0xf] }
  0x9f   :  { %v72_v60 = vpop.xlane.xlu0 %71  ;;  %v124_v15 = vmul.f32 0.00390625, %v96_v59  ;;  %472 = vmatpush3.msk.msra.mxu1 %vm344_vm10, %v332_v10 }
  0xa0   :  { %v116_v18 = vmul.f32 0.00390625, %v72_v60 }
  0xa1   :  { %v224_v30 = vrot.slane %v124_v15, %v171_v12 }
  0xa2   :  { %v99_v62 = vpop.xlane.xlu1 %98  ;;  %v172_v34 = vrot.slane %v116_v18, %v171_v12 }
  0xa3   :  { %v75_v63 = vpop.xlane.xlu0 %74  ;;  %v125_v19 = vmul.f32 0.00390625, %v99_v62  ;;  %v225_v47 = vsel %vm173_vm1, %v224_v30, %v220_v38 }
  0xa4   :  { %v117_v23 = vmul.f32 0.00390625, %v75_v63  ;;  %v174_v51 = vsel %vm173_vm1, %v172_v34, %v167_v43 }
  0xa5   :  { %v229_v35 = vrot.slane %v125_v19, %v178_v13 }
  0xa6   :  { %v102_v1 = vpop.xlane.xlu1 %101  ;;  %v179_v39 = vrot.slane %v117_v23, %v178_v13 }
  0xa7   :  { %v78_v3 = vpop.xlane.xlu0 %77  ;;  %v126_v24 = vmul.f32 0.00390625, %v102_v1  ;;  %v230_v52 = vsel %vm180_vm2, %v229_v35, %v225_v47 }
  0xa8   :  { %v118_v27 = vmul.f32 0.00390625, %v78_v3  ;;  %v181_v56 = vsel %vm180_vm2, %v179_v39, %v174_v51 }
  0xa9   :  { %v234_v40 = vrot.slane %v126_v24, %v185_v16 }
  0xaa   :  { %v105_v8 = vpop.xlane.xlu1 %104  ;;  %v186_v44 = vrot.slane %v118_v27, %v185_v16  ;;  %v438_v16 = vld [vmem:[%s617_s4] ss:$0 sm:$0xff] }
  0xab   :  { %v81_v11 = vpop.xlane.xlu0 %80  ;;  %v127_v28 = vmul.f32 0.00390625, %v105_v8  ;;  %v235_v57 = vsel %vm187_vm3, %v234_v40, %v230_v52 }
  0xac   :  { %v119_v31 = vmul.f32 0.00390625, %v81_v11  ;;  %v188_v61 = vsel %vm187_vm3, %v186_v44, %v181_v56  ;;  %v436_v11 = vld [vmem:[%s615_s2] ss:$0 sm:$0xff]  ;;  %s502_s2 = scalar_lea.vmem %s428_s21, 32 }
  0xad   :  { %v239_v45 = vrot.slane %v127_v28, %v192_v17  ;;  %p503_p5 = scmp.ne.s32.totalorder %s428_s21, %s502_s2  ;;  %p508_p7 = scmp.lt.s32.totalorder %s502_s2, %s502_s2 }
  0xae   :  { %v108_v21 = vpop.xlane.xlu1 %107  ;;  %v193_v48 = vrot.slane %v119_v31, %v192_v17 }
  0xaf   :  { %v84_v25 = vpop.xlane.xlu0 %83  ;;  %v128_v32 = vmul.f32 0.00390625, %v108_v21  ;;  %v240_v62 = vsel %vm194_vm4, %v239_v45, %v235_v57  ;;  %p509_p8 = por %p508_p7, %p507_p6 }
  0xb0   :  { %v120_v36 = vmul.f32 0.00390625, %v84_v25  ;;  %v195_v0 = vsel %vm194_vm4, %v193_v48, %v188_v61 }
  0xb1   :  { %v244_v49 = vrot.slane %v128_v32, %v199_v20  ;;  %p510_p9 = pnand %p509_p8, %p503_p5 }
  0xb2   :  { %v111_v37 = vpop.xlane.xlu1 %110  ;;  %v200_v53 = vrot.slane %v120_v36, %v199_v20 }
  0xb3   :  { %v129_v41 = vmul.f32 0.00390625, %v111_v37  ;;  %v87_v42 = vpop.xlane.xlu0 %86  ;;  %v245_v1 = vsel %vm201_vm5, %v244_v49, %v240_v62 }
  0xb4   :  { %v121_v46 = vmul.f32 0.00390625, %v87_v42  ;;  %v202_v3 = vsel %vm201_vm5, %v200_v53, %v195_v0 }
  0xb5   :  { %v249_v54 = vrot.slane %v129_v41, %v206_v29 }
  0xb6   :  { %v114_v55 = vpop.xlane.xlu1 %113  ;;  %v207_v58 = vrot.slane %v121_v46, %v206_v29 }
  0xb7   :  { %v130_v59 = vmul.f32 0.00390625, %v114_v55  ;;  %v90_v60 = vpop.xlane.xlu0 %89  ;;  %v250_v4 = vsel %vm208_vm6, %v249_v54, %v245_v1 }
  0xb8   :  { %v122_v63 = vmul.f32 0.00390625, %v90_v60  ;;  %v209_v6 = vsel %vm208_vm6, %v207_v58, %v202_v3 }
  0xb9   :  { %v254_v2 = vrot.slane %v130_v59, %v213_v50 }
  0xba   :  { %v214_v5 = vrot.slane %v122_v63, %v213_v50 }
  0xbb   :  { %v255_v7 = vsel %vm215_vm7, %v254_v2, %v250_v4 }
  0xbc   :  { %v216_v8 = vsel %vm215_vm7, %v214_v5, %v209_v6 }
  0xbd   :  { %v257_v9 = vsel %vm256_vm8, %v255_v7, %v216_v8 }
  0xbe   :  { %469 = vmatmul.mubr.msk.f32.vlgmr.msra.gmra.mxu0 %vm258_vm9, %v257_v9 }
 0x17e   :  { %v327_v12 = vpop.f32.mrf.mxu0 }
 0x17f   :  { %v328_v13 = vadd.f32 %v436_v11, %v327_v12 }
 0x180   :  { %v470_v14 = vpop.f32.mrf.mxu0 }
 0x181   :  { %v331_v15 = vmax.f32 %v328_v13, 0.0 }
 0x183   :  { %474 = vmatmul.mubr.msk.f32.vlgmr.msra.gmra.mxu1 %vm340_vm11, %v331_v15 }
 0x243   :  { %v414_v17 = vpop.f32.mrf.mxu1 }
 0x244   :  { %v415_v18 = vadd.f32 %v438_v16, %v414_v17 }
 0x245   :  { %v475_v19 = vpop.f32.mrf.mxu1 }
 0x246   :  { %v418_v20 = vmax.f32 %v415_v18, 0.0 }
 0x248   :  { %420 = vst.msk [vmem:[#allocation5] sm:$0x3] %vm419_vm12, %v418_v20 }
 0x249   :  { %513 = shalt.err (!%p510_p9)
}
 0x24a   :  { %430 = dma.vmem_to_hbm [thread:$0]  %s428_s21, 32, %s618_s5, [#allocation4]  }
 0x24b   :  { %524 = dma.done.wait [#allocation4], 32  }
 0x24c   :  { %525 = vsyncadd [#allocation4], 4294967264 }
 0x24d   :  { %434 = vsyncpa [#allocation3], 1 }
 0x24e   :  { %435 = vsyncpa [#allocation4], 1 }

</bundles_post_ra>
